<compile_context>
chip_gen: v7x
topology: tpu7x:2x2x1
jax: 0.10.0
libtpu: 0.0.40
codegen_flags: <defaults>
</compile_context>

<pallas_src>
import itertools

import jax
import jax.numpy as jnp
from jax import lax
from jax.experimental import pallas as pl
from jax.experimental.pallas import tpu as pltpu


def _k9_layout(hid_p):
    """Sublane-aligned im2col layout: one 8-aligned row group per 3x3 tap, plus one
    extra 8-row group whose first row is the constant-ones (folded BN2 bias) row."""
    group = ((hid_p + 7) // 8) * 8
    k9 = 9 * group + 8
    bias_row = 9 * group
    return group, k9, bias_row


def _build_mask(H, W, hid_p):
    """(K9, H*W) f32 mask in the aligned im2col layout: 1 where the (dh, dw) shifted
    tap is in-bounds, 0 on pad rows, 1 on the bias row."""
    group, k9, bias_row = _k9_layout(hid_p)
    HW = H * W
    idx = jnp.arange(HW, dtype=jnp.int32)
    h, w = idx // W, idx % W
    m = jnp.zeros((k9, HW), jnp.float32)
    for t, (dh, dw) in enumerate(itertools.product((-1, 0, 1), repeat=2)):
        ok = (h + dh >= 0) & (h + dh < H) & (w + dw >= 0) & (w + dw < W)
        m = m.at[t * group:t * group + hid_p, :].set(ok.astype(jnp.float32)[None, :])
    return m.at[bias_row, :].set(1.0)


def _tensorcores_per_chip():
    """Perf-only heuristic (never affects correctness): 1 TensorCore per JAX device on
    v2/v3/v5e/v6e-style chips, 2 on megacore chips (v4/v5p/v7x)."""
    try:
        kind = jax.devices()[0].device_kind.lower()
    except Exception:
        return 1
    if any(s in kind for s in ("v2", "v3", "lite", "v5e", "v6e")):
        return 1
    return 2


def block_forward(x_nchw, W1s, b1, W2pad, *, batch_block=None):
    """Pallas implementation of Block.forward (2-D, eval-mode BN). Layout: NCHW."""
    N, Cin, H, W = x_nchw.shape
    Hid = W1s.shape[0]
    Cout = W2pad.shape[0]
    HW = H * W
    GROUP, K9, BIAS_ROW = _k9_layout(Hid)
    assert Cin == Cout, "residual add requires in_p == out_p"
    assert W2pad.shape[1] == K9

    if batch_block is None:
        if _tensorcores_per_chip() > 1:
            batch_block = 1                  # parallel grid=(N,) -> both TensorCores busy
        else:
            batch_block = 1                  # single TC: fuse batch elements into one step
            for cand in range(min(N, 8), 0, -1):
                if N % cand == 0:
                    batch_block = cand
                    break
    NB = batch_block
    assert N % NB == 0

    x2 = x_nchw.reshape(N, Cin, HW)          # free reshape: NCHW is already (C, H*W)
    masks = _build_mask(H, W, Hid)           # (K9, HW), static given (H, W)

    def kernel(x_ref, w1_ref, b1_ref, w2_ref, m_ref, o_ref, cols_ref):
        # Hoisted once per grid step (constant index maps -> weights never re-DMA'd).
        w1 = w1_ref[...]                     # (Hid, Cin)   BN1 scale folded
        b1v = b1_ref[...]                    # (Hid, 1)     BN1 bias
        w2 = w2_ref[...]                     # (Cout, K9)   BN2 scale + bias folded
        m = m_ref[...]                       # (K9, HW)     border / bias-row mask

        for n in range(NB):                  # static unroll; independent chains interleave
            x2d = x_ref[n]                   # (Cin, HW)

            # --- bottle1: grouped 1x1 conv (dense masked matmul) + BN1 + ReLU ---
            mid = jnp.dot(w1, x2d, preferred_element_type=jnp.float32)
            mid = jnp.maximum(mid + b1v, 0.0)                       # (Hid, HW)

            # --- im2col for the 3x3 conv: each tap in its own 8-aligned row group ---
            c_ref = cols_ref.at[n]
            c_ref[...] = jnp.zeros((K9, HW), jnp.float32)           # clean pad rows (no stale VMEM)
            for t, (dh, dw) in enumerate(itertools.product((-1, 0, 1), repeat=2)):
                s = dh * W + dw
                rolled = mid if s == 0 else pltpu.roll(mid, shift=(-s) % HW, axis=1)
                c_ref[pl.ds(t * GROUP, Hid), :] = rolled            # aligned, unmasked write
            c_ref[pl.ds(BIAS_ROW, 1), :] = jnp.ones((1, HW), jnp.float32)  # folded-BN2-bias row

            # --- one wide border-mask multiply + ONE MXU matmul (K = K9, single pass) ---
            acc = jnp.dot(w2, c_ref[...] * m, preferred_element_type=jnp.float32)

            # --- residual add + final ReLU, lane-dense store ---
            o_ref[n] = jnp.maximum(acc + x2d, 0.0).astype(o_ref.dtype)

    out2 = pl.pallas_call(
        kernel,
        out_shape=jax.ShapeDtypeStruct((N, Cout, HW), x_nchw.dtype),
        grid=(N // NB,),
        in_specs=[
            pl.BlockSpec((NB, Cin, HW), lambda i: (i, 0, 0)),
            pl.BlockSpec((Hid, Cin), lambda i: (0, 0)),
            pl.BlockSpec((Hid, 1), lambda i: (0, 0)),
            pl.BlockSpec((Cout, K9), lambda i: (0, 0)),
            pl.BlockSpec((K9, HW), lambda i: (0, 0)),
        ],
        out_specs=pl.BlockSpec((NB, Cout, HW), lambda i: (i, 0, 0)),
        scratch_shapes=[pltpu.VMEM((NB, K9, HW), jnp.float32)],
        compiler_params=pltpu.CompilerParams(dimension_semantics=("parallel",)),
    )(x2, W1s, b1, W2pad, masks)

    return out2.reshape(N, Cout, H, W)


def make_params(key, in_p, out_p):
    """Deterministic synthetic parameters matching the PyTorch module shapes, packed
    into the kernel's BN-folded, sublane-aligned layout."""
    hid_p = out_p // 4
    cg = in_p // hid_p           # input channels per group of the grouped 1x1 conv
    group, k9, bias_row = _k9_layout(hid_p)
    eps = 1e-5
    ks = jax.random.split(key, 10)

    # Conv2d(in_p, hid_p, k=1, groups=hid_p, bias=False): weight (hid_p, cg, 1, 1)
    w1_g = jax.random.normal(ks[0], (hid_p, cg), jnp.float32) * 0.2
    # BatchNorm2d(hid_p), eval mode.
    gamma1 = jax.random.uniform(ks[1], (hid_p,), jnp.float32, 0.5, 1.5)
    beta1 = jax.random.normal(ks[2], (hid_p,), jnp.float32) * 0.1
    mean1 = jax.random.normal(ks[3], (hid_p,), jnp.float32) * 0.1
    var1 = jax.random.uniform(ks[4], (hid_p,), jnp.float32, 0.5, 1.5)
    scale1 = gamma1 / jnp.sqrt(var1 + eps)
    bias1 = beta1 - mean1 * scale1

    # Conv2d(hid_p, out_p, k=3, padding=1, bias=False): weight (out_p, hid_p, 3, 3)
    w2 = jax.random.normal(ks[5], (out_p, hid_p, 3, 3), jnp.float32) * 0.1
    # BatchNorm2d(out_p), eval mode.
    gamma2 = jax.random.uniform(ks[6], (out_p,), jnp.float32, 0.5, 1.5)
    beta2 = jax.random.normal(ks[7], (out_p,), jnp.float32) * 0.1
    mean2 = jax.random.normal(ks[8], (out_p,), jnp.float32) * 0.1
    var2 = jax.random.uniform(ks[9], (out_p,), jnp.float32, 0.5, 1.5)
    scale2 = gamma2 / jnp.sqrt(var2 + eps)
    bias2 = beta2 - mean2 * scale2

    # Dense (masked) equivalent of the grouped 1x1 conv, BN1 scale folded: (hid_p, in_p).
    W1t = jnp.zeros((hid_p, in_p), jnp.float32)
    for g in range(hid_p):
        W1t = W1t.at[g, g * cg:(g + 1) * cg].set(w1_g[g])
    W1s = scale1[:, None] * W1t

    # Sublane-aligned im2col weight (out_p, k9): column t*group + c holds
    # scale2 * w2[:, c, kh, kw] with (kh, kw) = (t // 3, t % 3) (tap order = the kernel's
    # itertools.product order); pad columns are 0; column `bias_row` holds the folded
    # BN2 bias, matched by the in-kernel constant-ones row.
    W2_mat = jnp.transpose(w2, (0, 2, 3, 1)).reshape(out_p, 9, hid_p) * scale2[:, None, None]
    W2pad = jnp.zeros((out_p, 9, group), jnp.float32).at[:, :, :hid_p].set(W2_mat)
    W2pad = jnp.concatenate(
        [W2pad.reshape(out_p, 9 * group), jnp.zeros((out_p, 8), jnp.float32)], axis=1)
    W2pad = W2pad.at[:, bias_row].set(bias2)

    raw = dict(w1_g=w1_g, w2=w2, scale1=scale1, bias1=bias1,
               scale2=scale2, bias2=bias2)
    packed = (W1s, bias1.reshape(hid_p, 1), W2pad)
    return packed, raw


def reference_forward(x_nchw, raw, in_p, out_p):
    """Pure-JAX reference (same math as the PyTorch module in eval mode)."""
    hid_p = out_p // 4
    cg = in_p // hid_p
    w1_oihw = raw["w1_g"].reshape(hid_p, cg, 1, 1)
    y = lax.conv_general_dilated(
        x_nchw, w1_oihw, (1, 1), "VALID",
        dimension_numbers=("NCHW", "OIHW", "NCHW"), feature_group_count=hid_p)
    y = y * raw["scale1"].reshape(1, hid_p, 1, 1) + raw["bias1"].reshape(1, hid_p, 1, 1)
    y = jnp.maximum(y, 0.0)
    z = lax.conv_general_dilated(
        y, raw["w2"], (1, 1), ((1, 1), (1, 1)),
        dimension_numbers=("NCHW", "OIHW", "NCHW"))
    z = z * raw["scale2"].reshape(1, out_p, 1, 1) + raw["bias2"].reshape(1, out_p, 1, 1)
    return jnp.maximum(z + x_nchw, 0.0)


if __name__ == "__main__":
    # Residual add in the module requires in_p == out_p (and same spatial size).
    N, in_p, out_p, H, W = 2, 16, 16, 16, 16

    key = jax.random.PRNGKey(0)
    kx, kp = jax.random.split(key)
    x = jax.random.normal(kx, (N, in_p, H, W), jnp.float32)

    packed, raw = make_params(kp, in_p, out_p)

    out = jax.block_until_ready(block_forward(x, *packed))

    ref = reference_forward(x, raw, in_p, out_p)
    assert out.shape == (N, out_p, H, W)
    assert jnp.allclose(out, ref, rtol=1e-3, atol=1e-3), (
        float(jnp.max(jnp.abs(out - ref))))

    print("KERNEL_OK")
</pallas_src>

<mosaic_0001>
module attributes {stable_mosaic.version = 11 : i64} {
  func.func @kernel(%arg0: i32, %arg1: memref<1x16x256xf32, #tpu.memory_space<vmem>>, %arg2: memref<4x16xf32, #tpu.memory_space<vmem>>, %arg3: memref<4x1xf32, #tpu.memory_space<vmem>>, %arg4: memref<16x80xf32, #tpu.memory_space<vmem>>, %arg5: memref<80x256xf32, #tpu.memory_space<vmem>>, %arg6: memref<1x16x256xf32, #tpu.memory_space<vmem>>, %arg7: memref<1x80x256xf32, #tpu.memory_space<vmem>>) attributes {dimension_semantics = [#tpu.dimension_semantics<parallel>], iteration_bounds = array<i64: 2>, scalar_prefetch = 0 : i64, scratch_operands = 1 : i64, tpu.core_type = #tpu.core_type<tc>, window_params = [{transform_indices = @transform_0, window_bounds = array<i64: 1, 16, 256>}, {pipeline_mode = #tpu.pipeline_mode<synchronous>, transform_indices = @transform_1, window_bounds = array<i64: 4, 16>}, {pipeline_mode = #tpu.pipeline_mode<synchronous>, transform_indices = @transform_2, window_bounds = array<i64: 4, 1>}, {pipeline_mode = #tpu.pipeline_mode<synchronous>, transform_indices = @transform_3, window_bounds = array<i64: 16, 80>}, {pipeline_mode = #tpu.pipeline_mode<synchronous>, transform_indices = @transform_4, window_bounds = array<i64: 80, 256>}, {transform_indices = @transform_5, window_bounds = array<i64: 1, 16, 256>}]} {
    %c0 = arith.constant 0 : index
    %c0_0 = arith.constant 0 : index
    %0 = vector.load %arg2[%c0, %c0_0] : memref<4x16xf32, #tpu.memory_space<vmem>>, vector<4x16xf32>
    %c0_1 = arith.constant 0 : index
    %c0_2 = arith.constant 0 : index
    %1 = vector.load %arg3[%c0_1, %c0_2] : memref<4x1xf32, #tpu.memory_space<vmem>>, vector<4x1xf32>
    %c0_3 = arith.constant 0 : index
    %c0_4 = arith.constant 0 : index
    %2 = vector.load %arg4[%c0_3, %c0_4] : memref<16x80xf32, #tpu.memory_space<vmem>>, vector<16x80xf32>
    %c0_5 = arith.constant 0 : index
    %c0_6 = arith.constant 0 : index
    %3 = vector.load %arg5[%c0_5, %c0_6] : memref<80x256xf32, #tpu.memory_space<vmem>>, vector<80x256xf32>
    %c0_7 = arith.constant 0 : index
    %c0_8 = arith.constant 0 : index
    %c0_9 = arith.constant 0 : index
    %4 = vector.load %arg1[%c0_7, %c0_8, %c0_9] : memref<1x16x256xf32, #tpu.memory_space<vmem>>, vector<1x16x256xf32>
    %5 = vector.shape_cast %4 : vector<1x16x256xf32> to vector<16x256xf32>
    %cst = arith.constant dense<0.000000e+00> : vector<4x256xf32>
    %6 = tpu.matmul %0, %5, %cst {dimension_numbers = #tpu.dot_dimension_numbers<[1], [0], [0], [1], [0, 0, 1, 1], [], []>} : vector<4x16xf32>, vector<16x256xf32>, vector<4x256xf32> -> vector<4x256xf32>
    %7 = vector.broadcast %1 : vector<4x1xf32> to vector<4x256xf32>
    %8 = arith.addf %6, %7 : vector<4x256xf32>
    %cst_10 = arith.constant 0.000000e+00 : f32
    %9 = vector.broadcast %cst_10 : f32 to vector<4x256xf32>
    %10 = arith.maximumf %8, %9 : vector<4x256xf32>
    %cst_11 = arith.constant 0.000000e+00 : f32
    %11 = vector.broadcast %cst_11 : f32 to vector<80x256xf32>
    %c0_12 = arith.constant 0 : index
    %c0_13 = arith.constant 0 : index
    %c0_14 = arith.constant 0 : index
    %12 = vector.load %arg7[%c0_12, %c0_13, %c0_14] : memref<1x80x256xf32, #tpu.memory_space<vmem>>, vector<1x80x256xf32>
    %13 = vector.shape_cast %12 : vector<1x80x256xf32> to vector<80x256xf32>
    %14 = vector.shape_cast %11 : vector<80x256xf32> to vector<1x80x256xf32>
    tpu.vector_store %arg7[%c0_12, %c0_13, %c0_14], %14 {strides = array<i32>} : memref<1x80x256xf32, #tpu.memory_space<vmem>>, vector<1x80x256xf32>,
    %c17_i32 = arith.constant 17 : i32
    %15 = tpu.dynamic_rotate %10 by %c17_i32 dim 1 : vector<4x256xf32>, i32 -> vector<4x256xf32>
    %c0_i32 = arith.constant 0 : i32
    %c0_i32_15 = arith.constant 0 : i32
    %c0_i32_16 = arith.constant 0 : i32
    %16 = tpu.memref_slice %arg7[%c0_i32, %c0_i32_15, %c0_i32_16] : memref<1x80x256xf32, #tpu.memory_space<vmem>> -> memref<1x80x256xf32, #tpu.memory_space<vmem>>
    %17 = tpu.memref_squeeze %16 : memref<1x80x256xf32, #tpu.memory_space<vmem>> -> memref<80x256xf32, #tpu.memory_space<vmem>>
    %c0_17 = arith.constant 0 : index
    %c0_18 = arith.constant 0 : index
    %18 = vector.load %17[%c0_17, %c0_18] : memref<80x256xf32, #tpu.memory_space<vmem>>, vector<4x256xf32>
    tpu.vector_store %17[%c0_17, %c0_18], %15 {strides = array<i32>} : memref<80x256xf32, #tpu.memory_space<vmem>>, vector<4x256xf32>,
    %c16_i32 = arith.constant 16 : i32
    %19 = tpu.dynamic_rotate %10 by %c16_i32 dim 1 : vector<4x256xf32>, i32 -> vector<4x256xf32>
    %c0_i32_19 = arith.constant 0 : i32
    %c0_i32_20 = arith.constant 0 : i32
    %c0_i32_21 = arith.constant 0 : i32
    %20 = tpu.memref_slice %arg7[%c0_i32_19, %c0_i32_20, %c0_i32_21] : memref<1x80x256xf32, #tpu.memory_space<vmem>> -> memref<1x80x256xf32, #tpu.memory_space<vmem>>
    %21 = tpu.memref_squeeze %20 : memref<1x80x256xf32, #tpu.memory_space<vmem>> -> memref<80x256xf32, #tpu.memory_space<vmem>>
    %c8 = arith.constant 8 : index
    %c0_22 = arith.constant 0 : index
    %22 = vector.load %21[%c8, %c0_22] : memref<80x256xf32, #tpu.memory_space<vmem>>, vector<4x256xf32>
    tpu.vector_store %21[%c8, %c0_22], %19 {strides = array<i32>} : memref<80x256xf32, #tpu.memory_space<vmem>>, vector<4x256xf32>,
    %c15_i32 = arith.constant 15 : i32
    %23 = tpu.dynamic_rotate %10 by %c15_i32 dim 1 : vector<4x256xf32>, i32 -> vector<4x256xf32>
    %c0_i32_23 = arith.constant 0 : i32
    %c0_i32_24 = arith.constant 0 : i32
    %c0_i32_25 = arith.constant 0 : i32
    %24 = tpu.memref_slice %arg7[%c0_i32_23, %c0_i32_24, %c0_i32_25] : memref<1x80x256xf32, #tpu.memory_space<vmem>> -> memref<1x80x256xf32, #tpu.memory_space<vmem>>
    %25 = tpu.memref_squeeze %24 : memref<1x80x256xf32, #tpu.memory_space<vmem>> -> memref<80x256xf32, #tpu.memory_space<vmem>>
    %c16 = arith.constant 16 : index
    %c0_26 = arith.constant 0 : index
    %26 = vector.load %25[%c16, %c0_26] : memref<80x256xf32, #tpu.memory_space<vmem>>, vector<4x256xf32>
    tpu.vector_store %25[%c16, %c0_26], %23 {strides = array<i32>} : memref<80x256xf32, #tpu.memory_space<vmem>>, vector<4x256xf32>,
    %c1_i32 = arith.constant 1 : i32
    %27 = tpu.dynamic_rotate %10 by %c1_i32 dim 1 : vector<4x256xf32>, i32 -> vector<4x256xf32>
    %c0_i32_27 = arith.constant 0 : i32
    %c0_i32_28 = arith.constant 0 : i32
    %c0_i32_29 = arith.constant 0 : i32
    %28 = tpu.memref_slice %arg7[%c0_i32_27, %c0_i32_28, %c0_i32_29] : memref<1x80x256xf32, #tpu.memory_space<vmem>> -> memref<1x80x256xf32, #tpu.memory_space<vmem>>
    %29 = tpu.memref_squeeze %28 : memref<1x80x256xf32, #tpu.memory_space<vmem>> -> memref<80x256xf32, #tpu.memory_space<vmem>>
    %c24 = arith.constant 24 : index
    %c0_30 = arith.constant 0 : index
    %30 = vector.load %29[%c24, %c0_30] : memref<80x256xf32, #tpu.memory_space<vmem>>, vector<4x256xf32>
    tpu.vector_store %29[%c24, %c0_30], %27 {strides = array<i32>} : memref<80x256xf32, #tpu.memory_space<vmem>>, vector<4x256xf32>,
    %c0_i32_31 = arith.constant 0 : i32
    %c0_i32_32 = arith.constant 0 : i32
    %c0_i32_33 = arith.constant 0 : i32
    %31 = tpu.memref_slice %arg7[%c0_i32_31, %c0_i32_32, %c0_i32_33] : memref<1x80x256xf32, #tpu.memory_space<vmem>> -> memref<1x80x256xf32, #tpu.memory_space<vmem>>
    %32 = tpu.memref_squeeze %31 : memref<1x80x256xf32, #tpu.memory_space<vmem>> -> memref<80x256xf32, #tpu.memory_space<vmem>>
    %c32 = arith.constant 32 : index
    %c0_34 = arith.constant 0 : index
    %33 = vector.load %32[%c32, %c0_34] : memref<80x256xf32, #tpu.memory_space<vmem>>, vector<4x256xf32>
    tpu.vector_store %32[%c32, %c0_34], %10 {strides = array<i32>} : memref<80x256xf32, #tpu.memory_space<vmem>>, vector<4x256xf32>,
    %c255_i32 = arith.constant 255 : i32
    %34 = tpu.dynamic_rotate %10 by %c255_i32 dim 1 : vector<4x256xf32>, i32 -> vector<4x256xf32>
    %c0_i32_35 = arith.constant 0 : i32
    %c0_i32_36 = arith.constant 0 : i32
    %c0_i32_37 = arith.constant 0 : i32
    %35 = tpu.memref_slice %arg7[%c0_i32_35, %c0_i32_36, %c0_i32_37] : memref<1x80x256xf32, #tpu.memory_space<vmem>> -> memref<1x80x256xf32, #tpu.memory_space<vmem>>
    %36 = tpu.memref_squeeze %35 : memref<1x80x256xf32, #tpu.memory_space<vmem>> -> memref<80x256xf32, #tpu.memory_space<vmem>>
    %c40 = arith.constant 40 : index
    %c0_38 = arith.constant 0 : index
    %37 = vector.load %36[%c40, %c0_38] : memref<80x256xf32, #tpu.memory_space<vmem>>, vector<4x256xf32>
    tpu.vector_store %36[%c40, %c0_38], %34 {strides = array<i32>} : memref<80x256xf32, #tpu.memory_space<vmem>>, vector<4x256xf32>,
    %c241_i32 = arith.constant 241 : i32
    %38 = tpu.dynamic_rotate %10 by %c241_i32 dim 1 : vector<4x256xf32>, i32 -> vector<4x256xf32>
    %c0_i32_39 = arith.constant 0 : i32
    %c0_i32_40 = arith.constant 0 : i32
    %c0_i32_41 = arith.constant 0 : i32
    %39 = tpu.memref_slice %arg7[%c0_i32_39, %c0_i32_40, %c0_i32_41] : memref<1x80x256xf32, #tpu.memory_space<vmem>> -> memref<1x80x256xf32, #tpu.memory_space<vmem>>
    %40 = tpu.memref_squeeze %39 : memref<1x80x256xf32, #tpu.memory_space<vmem>> -> memref<80x256xf32, #tpu.memory_space<vmem>>
    %c48 = arith.constant 48 : index
    %c0_42 = arith.constant 0 : index
    %41 = vector.load %40[%c48, %c0_42] : memref<80x256xf32, #tpu.memory_space<vmem>>, vector<4x256xf32>
    tpu.vector_store %40[%c48, %c0_42], %38 {strides = array<i32>} : memref<80x256xf32, #tpu.memory_space<vmem>>, vector<4x256xf32>,
    %c240_i32 = arith.constant 240 : i32
    %42 = tpu.dynamic_rotate %10 by %c240_i32 dim 1 : vector<4x256xf32>, i32 -> vector<4x256xf32>
    %c0_i32_43 = arith.constant 0 : i32
    %c0_i32_44 = arith.constant 0 : i32
    %c0_i32_45 = arith.constant 0 : i32
    %43 = tpu.memref_slice %arg7[%c0_i32_43, %c0_i32_44, %c0_i32_45] : memref<1x80x256xf32, #tpu.memory_space<vmem>> -> memref<1x80x256xf32, #tpu.memory_space<vmem>>
    %44 = tpu.memref_squeeze %43 : memref<1x80x256xf32, #tpu.memory_space<vmem>> -> memref<80x256xf32, #tpu.memory_space<vmem>>
    %c56 = arith.constant 56 : index
    %c0_46 = arith.constant 0 : index
    %45 = vector.load %44[%c56, %c0_46] : memref<80x256xf32, #tpu.memory_space<vmem>>, vector<4x256xf32>
    tpu.vector_store %44[%c56, %c0_46], %42 {strides = array<i32>} : memref<80x256xf32, #tpu.memory_space<vmem>>, vector<4x256xf32>,
    %c239_i32 = arith.constant 239 : i32
    %46 = tpu.dynamic_rotate %10 by %c239_i32 dim 1 : vector<4x256xf32>, i32 -> vector<4x256xf32>
    %c0_i32_47 = arith.constant 0 : i32
    %c0_i32_48 = arith.constant 0 : i32
    %c0_i32_49 = arith.constant 0 : i32
    %47 = tpu.memref_slice %arg7[%c0_i32_47, %c0_i32_48, %c0_i32_49] : memref<1x80x256xf32, #tpu.memory_space<vmem>> -> memref<1x80x256xf32, #tpu.memory_space<vmem>>
    %48 = tpu.memref_squeeze %47 : memref<1x80x256xf32, #tpu.memory_space<vmem>> -> memref<80x256xf32, #tpu.memory_space<vmem>>
    %c64 = arith.constant 64 : index
    %c0_50 = arith.constant 0 : index
    %49 = vector.load %48[%c64, %c0_50] : memref<80x256xf32, #tpu.memory_space<vmem>>, vector<4x256xf32>
    tpu.vector_store %48[%c64, %c0_50], %46 {strides = array<i32>} : memref<80x256xf32, #tpu.memory_space<vmem>>, vector<4x256xf32>,
    %cst_51 = arith.constant 1.000000e+00 : f32
    %50 = vector.broadcast %cst_51 : f32 to vector<1x256xf32>
    %c0_i32_52 = arith.constant 0 : i32
    %c0_i32_53 = arith.constant 0 : i32
    %c0_i32_54 = arith.constant 0 : i32
    %51 = tpu.memref_slice %arg7[%c0_i32_52, %c0_i32_53, %c0_i32_54] : memref<1x80x256xf32, #tpu.memory_space<vmem>> -> memref<1x80x256xf32, #tpu.memory_space<vmem>>
    %52 = tpu.memref_squeeze %51 : memref<1x80x256xf32, #tpu.memory_space<vmem>> -> memref<80x256xf32, #tpu.memory_space<vmem>>
    %c72 = arith.constant 72 : index
    %c0_55 = arith.constant 0 : index
    %53 = vector.load %52[%c72, %c0_55] : memref<80x256xf32, #tpu.memory_space<vmem>>, vector<1x256xf32>
    tpu.vector_store %52[%c72, %c0_55], %50 {strides = array<i32>} : memref<80x256xf32, #tpu.memory_space<vmem>>, vector<1x256xf32>,
    %c0_56 = arith.constant 0 : index
    %c0_57 = arith.constant 0 : index
    %c0_58 = arith.constant 0 : index
    %54 = vector.load %arg7[%c0_56, %c0_57, %c0_58] : memref<1x80x256xf32, #tpu.memory_space<vmem>>, vector<1x80x256xf32>
    %55 = vector.shape_cast %54 : vector<1x80x256xf32> to vector<80x256xf32>
    %56 = arith.mulf %55, %3 : vector<80x256xf32>
    %cst_59 = arith.constant dense<0.000000e+00> : vector<16x256xf32>
    %57 = tpu.matmul %2, %56, %cst_59 {dimension_numbers = #tpu.dot_dimension_numbers<[1], [0], [0], [1], [0, 0, 1, 1], [], []>} : vector<16x80xf32>, vector<80x256xf32>, vector<16x256xf32> -> vector<16x256xf32>
    %58 = arith.addf %57, %5 : vector<16x256xf32>
    %cst_60 = arith.constant 0.000000e+00 : f32
    %59 = vector.broadcast %cst_60 : f32 to vector<16x256xf32>
    %60 = arith.maximumf %58, %59 : vector<16x256xf32>
    %c0_61 = arith.constant 0 : index
    %c0_62 = arith.constant 0 : index
    %c0_63 = arith.constant 0 : index
    %61 = vector.load %arg6[%c0_61, %c0_62, %c0_63] : memref<1x16x256xf32, #tpu.memory_space<vmem>>, vector<1x16x256xf32>
    %62 = vector.shape_cast %61 : vector<1x16x256xf32> to vector<16x256xf32>
    %63 = vector.shape_cast %60 : vector<16x256xf32> to vector<1x16x256xf32>
    tpu.vector_store %arg6[%c0_61, %c0_62, %c0_63], %63 {strides = array<i32>} : memref<1x16x256xf32, #tpu.memory_space<vmem>>, vector<1x16x256xf32>,
    return
  }
  func.func @transform_0(%arg0: i32) -> (i32, i32, i32) {
    %c0_i32 = arith.constant 0 : i32
    %c0_i32_0 = arith.constant 0 : i32
    %c0_i32_1 = arith.constant 0 : i32
    return %arg0, %c0_i32, %c0_i32_0 : i32, i32, i32
  }
  func.func @transform_1(%arg0: i32) -> (i32, i32) {
    %c0_i32 = arith.constant 0 : i32
    %c0_i32_0 = arith.constant 0 : i32
    %c0_i32_1 = arith.constant 0 : i32
    return %c0_i32, %c0_i32_0 : i32, i32
  }
  func.func @transform_2(%arg0: i32) -> (i32, i32) {
    %c0_i32 = arith.constant 0 : i32
    %c0_i32_0 = arith.constant 0 : i32
    %c0_i32_1 = arith.constant 0 : i32
    return %c0_i32, %c0_i32_0 : i32, i32
  }
  func.func @transform_3(%arg0: i32) -> (i32, i32) {
    %c0_i32 = arith.constant 0 : i32
    %c0_i32_0 = arith.constant 0 : i32
    %c0_i32_1 = arith.constant 0 : i32
    return %c0_i32, %c0_i32_0 : i32, i32
  }
  func.func @transform_4(%arg0: i32) -> (i32, i32) {
    %c0_i32 = arith.constant 0 : i32
    %c0_i32_0 = arith.constant 0 : i32
    %c0_i32_1 = arith.constant 0 : i32
    return %c0_i32, %c0_i32_0 : i32, i32
  }
  func.func @transform_5(%arg0: i32) -> (i32, i32, i32) {
    %c0_i32 = arith.constant 0 : i32
    %c0_i32_0 = arith.constant 0 : i32
    %c0_i32_1 = arith.constant 0 : i32
    return %arg0, %c0_i32, %c0_i32_0 : i32, i32, i32
  }
}

</mosaic_0001>

<bundles_post_ra>
// kernel: tpu_custom_call.1
= control target key start
LH: loop header
LB: loop body
LE: loop exit
PB: predicated region body
PF: predicated region fallthrough
CT: control target
= control target key end

     0   :  { %s1368_s0 = inlined_call_operand.hbm [shape: f32[2,16,256], index: 0, kind: input, shape index: {}]   ;;  %s1369_s1 = inlined_call_operand.hbm [shape: f32[4,16], index: 1, kind: input, shape index: {}]   ;;  %s1370_s2 = inlined_call_operand.vmem [shape: f32[4,1], index: 2, kind: input, shape index: {}]   ;;  %s1371_s3 = inlined_call_operand.vmem [shape: f32[16,80], index: 3, kind: input, shape index: {}]   ;;  %s1372_s4 = inlined_call_operand.hbm [shape: f32[80,256], index: 4, kind: input, shape index: {}]   ;;  %s1373_s5 = inlined_call_operand.hbm [shape: f32[2,16,256], index: 5, kind: output, shape index: {}]  }
   0x1   :  { %1379 = sst [smem:[#allocation14_spill]] %s1369_s1 }
   0x2   :  { %10 = vsyncpa [#allocation4], 0 }
   0x3   :  { %12 = vsyncpa [#allocation4 + $0x1], 0 }
   0x4   :  { %13 = vsyncpa [#allocation7], 0 }
   0x5   :  { %14 = vsyncpa [#allocation5], 0 }
   0x6   :  { %16 = vsyncpa [#allocation5 + $0x1], 0  ;;  %s1056_s18 = smov 0   ;;  %s1058_s19 = smov 0  }
   0x7   :  { %s1060_s20 = smov 0   ;;  %s1062_s21 = smov 0  }
   0x8 LB: > { %s1077_s22 = sadd.s32 4294967295, %s1006_s21   ;;  %s721_s23 = sadd.s32 4294967294, %s1006_s21   ;;  %s1006_s21 = sphi %s1062_s21, %s1402_s21   ;;  %s1002_s20 = sphi %s1060_s20, %s1401_s20   ;;  %s998_s19 = sphi %s1058_s19, %s1400_s19   ;;  %s994_s18 = sphi %s1056_s18, %s1399_s18  }
   0x9   : > { %s1081_s24 = sadd.s32 1, %s1006_s21   ;;  %s29_s25 = sadd.s32 1, %s1002_s20 }
   0xa   : > { %s26_s26 = ssub.s32 %s1006_s21, %s1081_s24  ;;  %p36_p0 = scmp.ne.s32.totalorder %s1002_s20, %s998_s19 }
   0xb   : > { %p27_p1 = scmp.eq.s32.totalorder %s26_s26, 0  ;;  %p37_p2 = scmp.eq.s32.totalorder %s1006_s21, 0 }
   0xc   : > { %p42_p3 = scmp.ne.s32.totalorder %s998_s19, %s994_s18  ;;  %p1374_p4 = scmp.eq.s32.totalorder %s1077_s22, 0 }
   0xd   : > { %s1093_s27 = scalar_select %p27_p1, %s1002_s20, %s29_s25  }
   0xe   : > { %p1095_p5 = por %p37_p2, %p36_p0  ;;  %p1101_p6 = por %p1374_p4, %p42_p3 }
   0xf   : > { %1380 = sst [smem:[#allocation13_spill]] %s1093_s27  ;;  %p150_p7 = scmp.eq.s32.totalorder %s1077_s22, 1 }
  0x10   : > { %s1382_s29 = scalar_select %p1101_p6, 1, 0 }
  0x11   : > { %p156_p8 = scmp.eq.s32.totalorder %s721_s23, 1  ;;  %p722_p9 = scmp.ge.s32.totalorder %s1006_s21, 1 }
  0x12   : > { %p163_p10 = scmp.lt.s32.totalorder %s1006_s21, 3  ;;  %p1108_p11 = por %p150_p7, %p36_p0 }
  0x13   : > { %p1112_p12 = por %p156_p8, %p42_p3  ;;  %s1008_s8 = smov [#allocation6]  }
  0x14   : > { %s1383_s30 = scalar_select %p1108_p11, 1, 0 }
  0x15   : > { %s1384_s6 = scalar_select %p1112_p12, 1, 0 }
  0x16   : > { %p1116_p13 = pnand %p722_p9, %p163_p10  ;;  %s176_s9 = sshll.u32 %s1008_s8, 4  ;;  %s177_s9 = int_to_ptr.vmem [resolvable:$true] %s176_s9 }
  0x17   : > { %p797_p4 = scmp.lt.s32.totalorder %s1006_s21, 2  ;;  %p1386_p0 = scmp.eq.s32.totalorder %s1077_s22, 0 }
  0x18   : > { %s1385_s7 = scalar_select %p1116_p13, 1, 0 }
  0x19   : > { %p780_p2 = pneg %p1116_p13  ;;  %p1132_p3 = pnand %p797_p4, %p1095_p5 }
  0x1a   : > { %s1009_s12 = smov [#allocation8]   ;;  %s1389_s1 = sld [smem:[#allocation14_spill]] }
  0x1b   : > { %p1126_p7 = pnand %p780_p2, %p1386_p0  ;;  %s192_s13 = sshll.u32 %s1009_s12, 4  ;;  %s1136_s13 = int_to_ptr.vmem [resolvable:$true] %s192_s13 }
  0x1c   : > { %s1388_s11 = scalar_select %p1132_p3, 1, 0 }
  0x1d   : > { %p852_p9 = pneg %p1126_p7 }
  0x20   : > { %s850_s16 = scalar_lea.hbm %s1389_s1, 64 }
  0x21   : > { %p851_p8 = scmp.ne.s32.totalorder %s1389_s1, %s850_s16  ;;  %p857_p10 = scmp.lt.u32.totalorder %s850_s16, %s1389_s1 }
  0x23   : > { %p853_p4 = pnand %p852_p9, %p851_p8 }
  0x25   : > { %p854_p5 = pneg %p853_p4 }
  0x27   : > { %p859_p2 = pnand %p857_p10, %p854_p5 }
  0x29   : > { %862 = shalt.err (!%p859_p2)
}
  0x2a   : > { %s863_s28 = scalar_lea.vmem %s177_s9, 64  ;;  %p871_p11 = scmp.lt.s32.totalorder %s177_s9, %s177_s9 }
  0x2b   : > { %p864_p0 = scmp.ne.s32.totalorder %s177_s9, %s863_s28  ;;  %p872_p6 = scmp.lt.s32.totalorder %s863_s28, %s863_s28 }
  0x2d   : > { %p866_p1 = pnand %p864_p0, %p852_p9  ;;  %p873_p13 = por %p872_p6, %p871_p11 }
  0x2f   : > { %p867_p12 = pneg %p866_p1 }
  0x31   : > { %p874_p3 = pnand %p873_p13, %p867_p12 }
  0x33   : > { %877 = shalt.err (!%p874_p3)
}
  0x34   : > { %783 = dma.hbm_to_vmem [thread:$0]  (!%p1126_p7), %s1389_s1, 64, %s177_s9, [#allocation7]  }
  0x35   : > { %s206_s14 = sand.u32 1, %s1002_s20   ;;  %s878_s17 = scalar_lea.hbm %s1372_s4, 2560 }
  0x36   : > { %p879_p1 = scmp.ne.s32.totalorder %s1372_s4, %s878_s17  ;;  %p885_p12 = scmp.lt.u32.totalorder %s878_s17, %s1372_s4 }
  0x38   : > { %p881_p6 = pnand %p879_p1, %p852_p9 }
  0x3a   : > { %p882_p11 = pneg %p881_p6 }
  0x3c   : > { %p887_p13 = pnand %p885_p12, %p882_p11 }
  0x3e   : > { %890 = shalt.err (!%p887_p13)
}
  0x3f   : > { %s891_s9 = scalar_lea.vmem %s1136_s13, 2560  ;;  %p899_p5 = scmp.lt.s32.totalorder %s1136_s13, %s1136_s13 }
  0x40   : > { %p892_p3 = scmp.ne.s32.totalorder %s1136_s13, %s891_s9  ;;  %p900_p10 = scmp.lt.s32.totalorder %s891_s9, %s891_s9 }
  0x42   : > { %p894_p8 = pnand %p892_p3, %p852_p9  ;;  %p901_p2 = por %p900_p10, %p899_p5 }
  0x44   : > { %p895_p4 = pneg %p894_p8 }
  0x46   : > { %p902_p0 = pnand %p901_p2, %p895_p4 }
  0x48   : > { %905 = shalt.err (!%p902_p0)
}
  0x49   : > { %s1010_s8 = smov 256   ;;  %s1011_s12 = smov 16  }
  0x4a   : > { %786 = dma.hbm_to_vmem [thread:$0]  (!%p1126_p7), %s1372_s4, 2560, %s1136_s13, [#allocation7], %s1010_s8, %s1010_s8, %s1011_s12  }
  0x4b   : > { %s726_s17 = sshll.u32 %s206_s14, 5  ;;  %s742_s23 = sshll.u32 %s1006_s21, 9 }
  0x4c   : > { %s1193_s28 = scalar_lea.hbm %s1368_s0, %s742_s23  ;;  %s210_s9 = scalar_lea.vmem [#allocation3], %s726_s17 }
  0x4d   : > { %s217_s10 = sshll.u32 %s210_s9, 4  ;;  %s1197_s1 = scalar_lea.sflag [#allocation4], %s206_s14  ;;  %s1195_s10 = int_to_ptr.vmem [resolvable:$true] %s217_s10 }
  0x4e   : > { %s906_s27 = scalar_lea.hbm %s1193_s28, 512  ;;  %p1390_p7 = scmp.ne.s32.totalorder %s1388_s11, 0 }
  0x4f   : > { %p907_p9 = scmp.ne.s32.totalorder %s1193_s28, %s906_s27  ;;  %s911_s16 = scalar_lea.hbm %s1368_s0, 1024 }
  0x50   : > { %p908_p1 = pneg %p1390_p7  ;;  %p912_p12 = scmp.lt.u32.totalorder %s1193_s28, %s1368_s0 }
  0x51   : > { %p913_p13 = scmp.lt.u32.totalorder %s911_s16, %s906_s27  ;;  %p915_p8 = scmp.lt.u32.totalorder %s906_s27, %s1193_s28 }
  0x52   : > { %p909_p6 = pnand %p908_p1, %p907_p9 }
  0x53   : > { %p914_p3 = por %p913_p13, %p912_p12 }
  0x54   : > { %p910_p11 = pneg %p909_p6 }
  0x55   : > { %p916_p4 = por %p915_p8, %p914_p3 }
  0x57   : > { %p917_p5 = pnand %p916_p4, %p910_p11 }
  0x59   : > { %920 = shalt.err (!%p917_p5)
}
  0x5a   : > { %s921_s14 = scalar_lea.vmem %s1195_s10, 512  ;;  %s1012_s17 = smov [#allocation3]  }
  0x5b   : > { %p922_p10 = scmp.ne.s32.totalorder %s1195_s10, %s921_s14  ;;  %s926_s26 = sshll.u32 %s1012_s17, 4  ;;  %s927_s26 = int_to_ptr.vmem [resolvable:$false] %s926_s26 }
  0x5c   : > { %s928_s9 = scalar_lea.vmem %s927_s26, 1024  ;;  %p929_p9 = scmp.lt.s32.totalorder %s1195_s10, %s927_s26 }
  0x5d   : > { %p924_p2 = pnand %p922_p10, %p908_p1  ;;  %p930_p6 = scmp.lt.s32.totalorder %s928_s9, %s921_s14 }
  0x5f   : > { %p925_p0 = pneg %p924_p2  ;;  %p931_p12 = por %p930_p6, %p929_p9 }
  0x61   : > { %p932_p13 = pnand %p931_p12, %p925_p0 }
  0x63   : > { %935 = shalt.err (!%p932_p13)
}
  0x64   : > { %790 = dma.hbm_to_vmem [thread:$0]  (!%p1390_p7), %s1193_s28, 512, %s1195_s10, %s1197_s1, %s1010_s8, %s1010_s8, %s1011_s12  }
  0x65   : > { %p1391_p1 = scmp.ne.s32.totalorder %s1385_s7, 0 }
  0x66   : > { %s1231_s27 = sand.u32 (!%p1391_p1), 1, %s998_s19   ;;  %p1392_p11 = scmp.ne.s32.totalorder (!%p1391_p1), %s1382_s29, 0 }
  0x67   : > { %229 = sbr.rel (%p1391_p1) target bundleno = 733 (0x2dd), region = 40  ;;  %s730_s13 = sshll.u32 (!%p1391_p1), %s1231_s27, 5 }
  0x68   : > { %s232_s15 = scalar_lea.sflag (!%p1391_p1), [#allocation4], %s1231_s27  ;;  %s1237_s11 = scalar_lea.vmem (!%p1391_p1), [#allocation3], %s730_s13 }
  0x6e   : > { %981 = dma.done.wait (%p1392_p11), %s232_s15, 512  }
  0x6f   : > { %983 = vsyncadd (%p1392_p11), %s232_s15, 4294966784  ;;  %p1393_p7 = scmp.eq.s32.totalorder %s1077_s22, 0 }
  0x71   : > { %985 = dma.done.wait (%p1393_p7), [#allocation7], 2624   ;;  %p1394_p3 = pmov %p1393_p7 }
  0x72   : > { %v1013_v0 = vmov 0.0   ;;  %v1014_v1 = vmov 0   ;;  %v1270_v2 = vld [vmem:[%s1237_s11 + $0x8] sm:$0xff]  ;;  %v1273_v3 = vld [vmem:[%s1237_s11 + $0x18] sm:$0xff]  ;;  %v1276_v4 = vld [vmem:[%s1237_s11] sm:$0xff]  ;;  %vm303_vm0 = vcmask 130048   ;;  %v404_v17 = vlaneseq }
  0x73   : > { %987 = vsyncadd (%p1394_p3), [#allocation7], 4294964672  ;;  %371 = vmatprep.mubr.f32.mxu0 %v1013_v0  ;;  %380 = vst [vmem:[#allocation2] sm:$0xff] %v1013_v0  ;;  %849 = vset.pattern.permute.xlu0 %v1014_v1  ;;  %v744_v5 = vpack.c.bf16 %v1273_v3, %v1270_v2  ;;  %v1281_v6 = vld [vmem:[%s1237_s11 + $0x10] sm:$0xff]  ;;  %v271_v7 = vld [vmem:[%s1370_s2] sm:$0xf] }
  0x74   : > { %381 = vst [vmem:[#allocation2 + $0x8] sm:$0xff] %v1013_v0  ;;  %382 = vst [vmem:[#allocation2 + $0x10] sm:$0xff] %v1013_v0  ;;  %594 = vmatprep.mubr.f32.mxu1 %v1013_v0  ;;  %v746_v8 = vpack.c.bf16 %v1281_v6, %v1276_v4  ;;  %300 = vperm.xlu0 %849, %v271_v7   ;;  %v270_v9 = vld [vmem:[#allocation6] sm:$0xf]  ;;  %s1015_s7 = smov 16   ;;  %s1016_s8 = smov 17  }
  0x75   : > { %383 = vst [vmem:[#allocation2 + $0x18] sm:$0xff] %v1013_v0  ;;  %384 = vst [vmem:[#allocation2 + $0x20] sm:$0xff] %v1013_v0  ;;  %745 = vmatprep.subr.bf16.mxu0 %v744_v5  ;;  %s1017_s12 = smov 15   ;;  %s1018_s28 = smov 1   ;;  %vm478_vm1 = vcmp.lt.s32.totalorder %v404_v17, 256  ;;  %v1020_v18 = vmov 1.0  }
  0x76   : > { %385 = vst [vmem:[#allocation2 + $0x28] sm:$0xff] %v1013_v0  ;;  %386 = vst [vmem:[#allocation2 + $0x30] sm:$0xff] %v1013_v0  ;;  %747 = vmatpush1.bf16.msra.mxu0 %v746_v8  ;;  %s1019_s10 = smov 127   ;;  %s1021_s16 = smov 113   ;;  %v1290_v19 = vand.u32 127, %v404_v17  ;;  %v277_v40 = vld [vmem:[#allocation8 + $0x18] sm:$0xff] }
  0x77   : > { %387 = vst [vmem:[#allocation2 + $0x38] sm:$0xff] %v1013_v0  ;;  %388 = vst [vmem:[#allocation2 + $0x40] sm:$0xff] %v1013_v0  ;;  %s1022_s23 = smov 112   ;;  %s1023_s25 = smov 111   ;;  %v275_v41 = vld [vmem:[#allocation8 + $0x8] sm:$0xff]  ;;  %v276_v43 = vld [vmem:[#allocation8 + $0x10] sm:$0xff] }
  0x78   : > { %389 = vst [vmem:[#allocation2 + $0x48] sm:$0xff] %v1013_v0  ;;  %390 = vst [vmem:[#allocation2 + $0x50] sm:$0xff] %v1013_v0  ;;  %vm415_vm2 = vcmp.lt.s32.totalorder %v1290_v19, 16  ;;  %vm424_vm3 = vcmp.lt.s32.totalorder %v1290_v19, 15  ;;  %vm406_vm4 = vcmp.lt.s32.totalorder %v1290_v19, 17  ;;  %vm433_vm5 = vcmp.lt.s32.totalorder %v1290_v19, 1 }
  0x79   : > { %391 = vst [vmem:[#allocation2 + $0x58] sm:$0xff] %v1013_v0  ;;  %392 = vst [vmem:[#allocation2 + $0x60] sm:$0xff] %v1013_v0  ;;  %734 = vmatmul.mubr.msk.f32.vlgmr.msra.gmra.mrb[0].mxu0 %vm303_vm0, %v270_v9  ;;  %vm444_vm6 = vcmp.lt.s32.totalorder %v1290_v19, 127  ;;  %vm453_vm7 = vcmp.lt.s32.totalorder %v1290_v19, 113  ;;  %v274_v44 = vld [vmem:[#allocation8] sm:$0xff]  ;;  %v281_v46 = vld [vmem:[#allocation8 + $0x38] sm:$0xff] }
  0x7a   : > { %393 = vst [vmem:[#allocation2 + $0x68] sm:$0xff] %v1013_v0  ;;  %394 = vst [vmem:[#allocation2 + $0x70] sm:$0xff] %v1013_v0  ;;  %v279_v49 = vld [vmem:[#allocation8 + $0x28] sm:$0xff]  ;;  %vm462_vm8 = vcmp.lt.s32.totalorder %v1290_v19, 112  ;;  %v280_v61 = vld [vmem:[#allocation8 + $0x30] sm:$0xff]  ;;  %vm471_vm9 = vcmp.lt.s32.totalorder %v1290_v19, 111 }
  0x7b   : > { %395 = vst [vmem:[#allocation2 + $0x78] sm:$0xff] %v1013_v0  ;;  %396 = vst [vmem:[#allocation2 + $0x80] sm:$0xff] %v1013_v0  ;;  %v285_v63 = vld [vmem:[#allocation8 + $0x58] sm:$0xff]  ;;  %vm523_vm10 = vcmask 654336   ;;  %s269_s15 = scalar_lea.vmem [#allocation9], %s730_s13  ;;  %s743_s1 = sshll.u32 %s1077_s22, 9 }
  0x7c   : > { %397 = vst [vmem:[#allocation2 + $0x88] sm:$0xff] %v1013_v0  ;;  %398 = vst [vmem:[#allocation2 + $0x90] sm:$0xff] %v1013_v0  ;;  %v289_v19 = vld [vmem:[#allocation8 + $0x78] sm:$0xff]  ;;  %s629_s11 = sshll.u32 %s269_s15, 4  ;;  %p1395_p4 = scmp.ne.s32.totalorder %s1383_s30, 0  ;;  %s1318_s11 = int_to_ptr.vmem [resolvable:$true] %s629_s11 }
  0x7d   : > { %399 = vst [vmem:[#allocation2 + $0x98] sm:$0xff] %v1013_v0  ;;  %s1024_s22 = smov [#allocation9]  }
  0x7e   : > { %481 = vst.msk [vmem:[#allocation2 + $0x90] ss:$8 sm:$0x3] %vm478_vm1, %v1020_v18 }
  0xf3   : > { %v301_v10 = vpop.permute.xlu0 %300 }
 0x14c   : > { %v373_v11 = vpop.f32.mrb[0].mxu0 }
 0x14d   : > { %v374_v12 = vadd.f32 %v373_v11, %v301_v10  ;;  %v375_v13 = vpop.f32.mrb[1].mxu0 }
 0x14e   : > { %v376_v14 = vadd.f32 %v375_v13, %v301_v10  ;;  %v278_v10 = vld [vmem:[#allocation8 + $0x20] sm:$0xff] }
 0x14f   : > { %v378_v15 = vmax.f32 %v374_v12, 0.0 }
 0x150   : > { %v379_v16 = vmax.f32 %v376_v14, 0.0 }
 0x151   : > { %438 = vst [vmem:[#allocation2 + $0x40] sm:$0xf] %v378_v15  ;;  %411 = vrot.lane.b32.xlu1 %v378_v15, %s1015_s7  ;;  %400 = vrot.lane.b32.xlu0 %v378_v15, %s1016_s8 }
 0x152   : > { %439 = vst [vmem:[#allocation2 + $0x48] sm:$0xf] %v379_v16 }
 0x155   : > { %420 = vrot.lane.b32.xlu1 %v378_v15, %s1017_s12  ;;  %413 = vrot.lane.b32.xlu0 %v379_v16, %s1015_s7 }
 0x159   : > { %429 = vrot.lane.b32.xlu1 %v378_v15, %s1018_s28  ;;  %422 = vrot.lane.b32.xlu0 %v379_v16, %s1017_s12  ;;  %s616_s12 = scalar_lea.sflag [#allocation5], %s1231_s27 }
 0x15d   : > { %402 = vrot.lane.b32.xlu1 %v379_v16, %s1016_s8  ;;  %431 = vrot.lane.b32.xlu0 %v379_v16, %s1018_s28  ;;  %s1323_s8 = scalar_lea.hbm %s1373_s5, %s743_s1  ;;  %s936_s28 = scalar_lea.vmem %s1318_s11, 512 }
 0x15e   : > { %p937_p8 = scmp.ne.s32.totalorder %s1318_s11, %s936_s28 }
 0x160   : > { %p938_p5 = pnand %p937_p8, %p1395_p4 }
 0x161   : > { %440 = vrot.lane.b32.xlu1 %v378_v15, %s1019_s10  ;;  %442 = vrot.lane.b32.xlu0 %v379_v16, %s1019_s10  ;;  %s940_s10 = sshll.u32 %s1024_s22, 4  ;;  %s941_s10 = int_to_ptr.vmem [resolvable:$false] %s940_s10 }
 0x162   : > { %p939_p10 = pneg %p938_p5  ;;  %p943_p2 = scmp.lt.s32.totalorder %s1318_s11, %s941_s10 }
 0x165   : > { %449 = vrot.lane.b32.xlu1 %v378_v15, %s1021_s16  ;;  %451 = vrot.lane.b32.xlu0 %v379_v16, %s1021_s16  ;;  %s942_s16 = scalar_lea.vmem %s941_s10, 1024 }
 0x166   : > { %p944_p0 = scmp.lt.s32.totalorder %s942_s16, %s936_s28 }
 0x168   : > { %p945_p9 = por %p944_p0, %p943_p2 }
 0x169   : > { %458 = vrot.lane.b32.xlu1 %v378_v15, %s1022_s23  ;;  %460 = vrot.lane.b32.xlu0 %v379_v16, %s1022_s23 }
 0x16a   : > { %p946_p6 = pnand %p945_p9, %p939_p10 }
 0x16d   : > { %467 = vrot.lane.b32.xlu1 %v378_v15, %s1023_s25  ;;  %469 = vrot.lane.b32.xlu0 %v379_v16, %s1023_s25  ;;  %v283_v15 = vld [vmem:[#allocation8 + $0x48] sm:$0xff] }
 0x16e   : > { %v492_v16 = vld [vmem:[#allocation2 + $0x48] sm:$0xff] }
 0x1c3   : > { %v412_v20 = vpop.permute.xlu1 %411  ;;  %v401_v21 = vpop.permute.xlu0 %400 }
 0x1c7   : > { %v421_v22 = vpop.permute.xlu1 %420  ;;  %v414_v23 = vpop.permute.xlu0 %413 }
 0x1c8   : > { %v416_v24 = vsel %vm415_vm2, %v412_v20, %v414_v23  ;;  %v417_v25 = vsel %vm415_vm2, %v414_v23, %v412_v20 }
 0x1c9   : > { %418 = vst [vmem:[#allocation2 + $0x10] sm:$0xf] %v417_v25  ;;  %419 = vst [vmem:[#allocation2 + $0x18] sm:$0xf] %v416_v24 }
 0x1cb   : > { %v430_v26 = vpop.permute.xlu1 %429  ;;  %v423_v27 = vpop.permute.xlu0 %422 }
 0x1cc   : > { %v425_v28 = vsel %vm424_vm3, %v421_v22, %v423_v27  ;;  %v426_v29 = vsel %vm424_vm3, %v423_v27, %v421_v22  ;;  %v282_v27 = vld [vmem:[#allocation8 + $0x40] sm:$0xff] }
 0x1cd   : > { %427 = vst [vmem:[#allocation2 + $0x20] sm:$0xf] %v426_v29  ;;  %428 = vst [vmem:[#allocation2 + $0x28] sm:$0xf] %v425_v28  ;;  %v491_v28 = vld [vmem:[#allocation2 + $0x40] sm:$0xff] }
 0x1cf   : > { %v403_v30 = vpop.permute.xlu1 %402  ;;  %v432_v31 = vpop.permute.xlu0 %431 }
 0x1d0   : > { %v407_v32 = vsel %vm406_vm4, %v401_v21, %v403_v30  ;;  %v408_v33 = vsel %vm406_vm4, %v403_v30, %v401_v21  ;;  %v434_v34 = vsel %vm433_vm5, %v430_v26, %v432_v31  ;;  %v435_v35 = vsel %vm433_vm5, %v432_v31, %v430_v26  ;;  %v486_v42 = vld [vmem:[#allocation2 + $0x18] sm:$0xff]  ;;  %v485_v45 = vld [vmem:[#allocation2 + $0x10] sm:$0xff] }
 0x1d1   : > { %409 = vst [vmem:[#allocation2] sm:$0xf] %v408_v33  ;;  %410 = vst [vmem:[#allocation2 + $0x8] sm:$0xf] %v407_v32  ;;  %v506_v54 = vmul.f32 %v486_v42, %v277_v40  ;;  %v505_v59 = vmul.f32 %v485_v45, %v276_v43  ;;  %v284_v21 = vld [vmem:[#allocation8 + $0x50] sm:$0xff]  ;;  %v512_v26 = vmul.f32 %v492_v16, %v283_v15  ;;  %v293_v40 = vld [vmem:[#allocation8 + $0x98] sm:$0xff] }
 0x1d2   : > { %436 = vst [vmem:[#allocation2 + $0x30] sm:$0xf] %v435_v35  ;;  %437 = vst [vmem:[#allocation2 + $0x38] sm:$0xf] %v434_v34  ;;  %v287_v34 = vld [vmem:[#allocation8 + $0x68] sm:$0xff]  ;;  %v286_v35 = vld [vmem:[#allocation8 + $0x60] sm:$0xff] }
 0x1d3   : > { %v441_v36 = vpop.permute.xlu1 %440  ;;  %v443_v37 = vpop.permute.xlu0 %442  ;;  %v292_v42 = vld [vmem:[#allocation8 + $0x90] sm:$0xff] }
 0x1d4   : > { %v445_v38 = vsel %vm444_vm6, %v441_v36, %v443_v37  ;;  %v446_v39 = vsel %vm444_vm6, %v443_v37, %v441_v36  ;;  %v488_v50 = vld [vmem:[#allocation2 + $0x28] sm:$0xff]  ;;  %v487_v11 = vld [vmem:[#allocation2 + $0x20] sm:$0xff]  ;;  %v511_v36 = vmul.f32 %v491_v28, %v282_v27 }
 0x1d5   : > { %447 = vst [vmem:[#allocation2 + $0x50] sm:$0xf] %v445_v38  ;;  %448 = vst [vmem:[#allocation2 + $0x58] sm:$0xf] %v446_v39  ;;  %v508_v9 = vmul.f32 %v488_v50, %v279_v49  ;;  %v507_v23 = vmul.f32 %v487_v11, %v278_v10  ;;  %v288_v38 = vld [vmem:[#allocation8 + $0x70] sm:$0xff] }
 0x1d7   : > { %v450_v47 = vpop.permute.xlu1 %449  ;;  %v452_v48 = vpop.permute.xlu0 %451 }
 0x1d8   : > { %v454_v51 = vsel %vm453_vm7, %v450_v47, %v452_v48  ;;  %v455_v52 = vsel %vm453_vm7, %v452_v48, %v450_v47  ;;  %v484_v53 = vld [vmem:[#allocation2 + $0x8] sm:$0xff]  ;;  %v483_v55 = vld [vmem:[#allocation2] sm:$0xff] }
 0x1d9   : > { %v490_v56 = vld [vmem:[#allocation2 + $0x38] sm:$0xff]  ;;  %456 = vst [vmem:[#allocation2 + $0x60] sm:$0xf] %v454_v51  ;;  %457 = vst [vmem:[#allocation2 + $0x68] sm:$0xf] %v455_v52  ;;  %v504_v57 = vmul.f32 %v484_v53, %v275_v41  ;;  %v503_v58 = vmul.f32 %v483_v55, %v274_v44  ;;  %v489_v62 = vld [vmem:[#allocation2 + $0x30] sm:$0xff] }
 0x1da   : > { %v510_v60 = vmul.f32 %v490_v56, %v281_v46  ;;  %v509_v14 = vmul.f32 %v489_v62, %v280_v61  ;;  %v502_v41 = vld [vmem:[#allocation2 + $0x98] sm:$0xff]  ;;  %v501_v46 = vld [vmem:[#allocation2 + $0x90] sm:$0xff]  ;;  %v290_v52 = vld [vmem:[#allocation8 + $0x80] sm:$0xff] }
 0x1db   : > { %v459_v1 = vpop.permute.xlu1 %458  ;;  %v461_v5 = vpop.permute.xlu0 %460  ;;  %v748_v7 = vpack.c.bf16 %v506_v54, %v504_v57  ;;  %v750_v8 = vpack.c.bf16 %v505_v59, %v503_v58  ;;  %v291_v51 = vld [vmem:[#allocation8 + $0x88] sm:$0xff]  ;;  %v522_v55 = vmul.f32 %v502_v41, %v293_v40  ;;  %v521_v56 = vmul.f32 %v501_v46, %v292_v42 }
 0x1dc   : > { %v463_v12 = vsel %vm462_vm8, %v459_v1, %v461_v5  ;;  %v464_v13 = vsel %vm462_vm8, %v461_v5, %v459_v1  ;;  %v494_v17 = vld [vmem:[#allocation2 + $0x58] sm:$0xff]  ;;  %v752_v18 = vpack.c.bf16 %v510_v60, %v508_v9  ;;  %v493_v22 = vld [vmem:[#allocation2 + $0x50] sm:$0xff]  ;;  %v754_v31 = vpack.c.bf16 %v509_v14, %v507_v23  ;;  %v273_v1 = vld [vmem:[%s1371_s3 + $0x8] sm:$0xff] }
 0x1dd   : > { %465 = vst [vmem:[#allocation2 + $0x70] sm:$0xf] %v463_v12  ;;  %466 = vst [vmem:[#allocation2 + $0x78] sm:$0xf] %v464_v13  ;;  %749 = vmatprep.subr.bf16.mxu1 %v748_v7  ;;  %v514_v20 = vmul.f32 %v494_v17, %v285_v63  ;;  %v513_v32 = vmul.f32 %v493_v22, %v284_v21  ;;  %v272_v63 = vld [vmem:[%s1371_s3] sm:$0xff] }
 0x1de   : > { %751 = vmatpush1.bf16.msra.mxu1 %v750_v8 }
 0x1df   : > { %v468_v24 = vpop.permute.xlu1 %467  ;;  %753 = vmatprep.subr.bf16.mxu1 %v752_v18  ;;  %v470_v25 = vpop.permute.xlu0 %469  ;;  %v756_v33 = vpack.c.bf16 %v514_v20, %v512_v26  ;;  %v758_v43 = vpack.c.bf16 %v513_v32, %v511_v36 }
 0x1e0   : > { %v472_v29 = vsel %vm471_vm9, %v468_v24, %v470_v25  ;;  %v473_v30 = vsel %vm471_vm9, %v470_v25, %v468_v24  ;;  %v496_v37 = vld [vmem:[#allocation2 + $0x68] sm:$0xff]  ;;  %v495_v39 = vld [vmem:[#allocation2 + $0x60] sm:$0xff] }
 0x1e1   : > { %474 = vst [vmem:[#allocation2 + $0x80] sm:$0xf] %v472_v29  ;;  %475 = vst [vmem:[#allocation2 + $0x88] sm:$0xf] %v473_v30  ;;  %v516_v47 = vmul.f32 %v496_v37, %v287_v34  ;;  %v515_v49 = vmul.f32 %v495_v39, %v286_v35 }
 0x1e2   : > { %755 = vmatpush1.bf16.msra.mxu1 %v754_v31 }
 0x1e3   : > { %757 = vmatprep.subr.bf16.mxu1 %v756_v33 }
 0x1e4   : > { %v498_v44 = vld [vmem:[#allocation2 + $0x78] sm:$0xff]  ;;  %v497_v45 = vld [vmem:[#allocation2 + $0x70] sm:$0xff] }
 0x1e5   : > { %v518_v48 = vmul.f32 %v498_v44, %v289_v19  ;;  %v517_v50 = vmul.f32 %v497_v45, %v288_v38 }
 0x1e6   : > { %759 = vmatpush1.bf16.msra.mxu1 %v758_v43 }
 0x1e7   : > { %v760_v53 = vpack.c.bf16 %v518_v48, %v516_v47  ;;  %v762_v54 = vpack.c.bf16 %v517_v50, %v515_v49 }
 0x1e8   : > { %v500_v57 = vld [vmem:[#allocation2 + $0x88] sm:$0xff]  ;;  %v499_v58 = vld [vmem:[#allocation2 + $0x80] sm:$0xff] }
 0x1e9   : > { %761 = vmatprep.subr.bf16.mxu1 %v760_v53  ;;  %v520_v59 = vmul.f32 %v500_v57, %v291_v51  ;;  %v519_v60 = vmul.f32 %v499_v58, %v290_v52 }
 0x1ea   : > { %763 = vmatpush1.bf16.msra.mxu1 %v762_v54 }
 0x1eb   : > { %v764_v61 = vpack.c.bf16 %v522_v55, %v520_v59  ;;  %v766_v62 = vpack.c.bf16 %v521_v56, %v519_v60 }
 0x1ed   : > { %765 = vmatprep.subr.bf16.mxu1 %v764_v61 }
 0x1ee   : > { %767 = vmatpush1.bf16.msra.mxu1 %v766_v62 }
 0x1f1   : > { %735 = vmatmul.mubr.msk.f32.vlgmr.msra.gmra.mrb[0].mxu1 %vm523_vm10, %v272_v63 }
 0x1f2   : > { %600 = vmatprep.mubr.f32.mxu1 %v1013_v0 }
 0x1f5   : > { %736 = vmatmul.mubr.msk.f32.gmra.mrb[2].mxu1 %vm523_vm10, %v273_v1 }
 0x2c4   : > { %v596_v5 = vpop.f32.mrb[0].mxu1 }
 0x2c5   : > { %v597_v7 = vadd.f32 %v596_v5, %v1276_v4  ;;  %v598_v8 = vpop.f32.mrb[1].mxu1 }
 0x2c6   : > { %v599_v9 = vadd.f32 %v598_v8, %v1270_v2 }
 0x2c7   : > { %v607_v10 = vmax.f32 %v597_v7, 0.0 }
 0x2c8   : > { %v608_v11 = vmax.f32 %v599_v9, 0.0  ;;  %v602_v12 = vpop.f32.mrb[2].mxu1 }
 0x2c9   : > { %611 = vst [vmem:[%s269_s15] sm:$0xff] %v607_v10  ;;  %v603_v0 = vadd.f32 %v602_v12, %v1281_v6  ;;  %v604_v13 = vpop.f32.mrb[3].mxu1 }
 0x2ca   : > { %612 = vst [vmem:[%s269_s15 + $0x8] sm:$0xff] %v608_v11  ;;  %v605_v14 = vadd.f32 %v604_v13, %v1273_v3 }
 0x2cb   : > { %v609_v2 = vmax.f32 %v603_v0, 0.0 }
 0x2cc   : > { %v610_v4 = vmax.f32 %v605_v14, 0.0 }
 0x2cd   : > { %613 = vst [vmem:[%s269_s15 + $0x10] sm:$0xff] %v609_v2 }
 0x2ce   : > { %614 = vst [vmem:[%s269_s15 + $0x18] sm:$0xff] %v610_v4 }
 0x2cf   : > { %949 = shalt.err (!%p946_p6)
}
 0x2d0   : > { %s950_s23 = scalar_lea.hbm %s1323_s8, 512  ;;  %s954_s17 = scalar_lea.hbm %s1373_s5, 1024 }
 0x2d1   : > { %p951_p12 = scmp.ne.s32.totalorder %s1323_s8, %s950_s23  ;;  %p955_p11 = scmp.lt.u32.totalorder %s1323_s8, %s1373_s5 }
 0x2d2   : > { %p956_p7 = scmp.lt.u32.totalorder %s954_s17, %s950_s23  ;;  %p958_p8 = scmp.lt.u32.totalorder %s950_s23, %s1323_s8 }
 0x2d3   : > { %p952_p13 = pnand %p951_p12, %p1395_p4 }
 0x2d4   : > { %p957_p3 = por %p956_p7, %p955_p11 }
 0x2d5   : > { %p953_p1 = pneg %p952_p13 }
 0x2d6   : > { %p959_p5 = por %p958_p8, %p957_p3 }
 0x2d8   : > { %p960_p10 = pnand %p959_p5, %p953_p1 }
 0x2da   : > { %963 = shalt.err (!%p960_p10)
}
 0x2db   : > { %s1025_s15 = smov 256  }
 0x2dc   : > { %778 = dma.vmem_to_hbm [thread:$0]  (%p1395_p4), %s1318_s11, 512, %s1323_s8, %s616_s12, %s1025_s15, %s1025_s15, %s1015_s7  }
 0x2dd PF: > { %s644_s1 = sand.u32 1, %s994_s18   ;;  %p1396_p2 = scmp.ne.s32.totalorder %s1384_s6, 0 }
 0x2de   : > { %p1397_p0 = scmp.ge.s32.totalorder %s1006_s21, 2  ;;  %s645_s13 = scalar_lea.sflag [#allocation5], %s644_s1 }
 0x2e0   : > { %p792_p9 = pnand %p1397_p0, %p1396_p2 }
 0x2e2   : > { %989 = dma.done.wait (!%p792_p9), %s645_s13, 512  }
 0x2e3   : > { %991 = vsyncadd (!%p792_p9), %s645_s13, 4294966784  ;;  %s1398_s30 = sld [smem:[#allocation13_spill]]  ;;  %p19_p6 = scmp.ge.s32.totalorder %s1081_s24, 4  }
 0x2e4   : > { %s1399_s18 = smov %s998_s19  ;;  %s1400_s19 = smov %s1002_s20 }
 0x2e5   : > { %s1402_s21 = smov %s1081_s24  ;;  %21 = sbr.rel (!%p19_p6) target bundleno = 8 (0x8), region = 94 }
 0x2e9   : > { %s1401_s20 = smov %s1398_s30 }
 0x2ec   :  { %650 = vsyncpa [#allocation4], 1 }
 0x2ed   :  { %652 = vsyncpa [#allocation4 + $0x1], 1 }
 0x2ee   :  { %653 = vsyncpa [#allocation7], 1 }
 0x2ef   :  { %654 = vsyncpa [#allocation5], 1 }
 0x2f0   :  { %656 = vsyncpa [#allocation5 + $0x1], 1 }

</bundles_post_ra>
